<compile_context>
chip_gen: v5e
topology: v5e:2x2
jax: 0.10.0
libtpu: 0.0.40
codegen_flags: <defaults>
</compile_context>

<pallas_src>
import jax
import jax.numpy as jnp
import numpy as np
from jax.experimental import pallas as pl
from jax.experimental.pallas import tpu as pltpu

_SMOOTH = 1e-5


def _pick_hw_tile(hw, max_tile=16384):
    """Largest multiple-of-128 divisor of H*W below max_tile (or full)."""
    if hw <= max_tile:
        return hw
    t = (max_tile // 128) * 128
    while t >= 128:
        if hw % t == 0:
            return t
        t -= 128
    return hw


def _pick_block_h(B, C, H, W, budget_bytes=8 << 20):
    """Largest multiple-of-8 divisor of H whose f32 logits tile fits budget."""
    if H % 8 != 0:
        return H
    best = 8
    for th in range(8, H + 1, 8):
        if H % th == 0 and B * C * th * W * 4 <= budget_bytes:
            best = th
    return best


def _lse_kernel(x_ref, lse_ref):
    """Per-pixel log-sum-exp over channels; lane-dense (C, T_HW) block."""
    x = x_ref[...]                                    # (C, T) f32 logits
    m = jnp.max(x, axis=0, keepdims=True)             # (1, T)
    s = jnp.sum(jnp.exp(x - m), axis=0, keepdims=True)
    lse_ref[...] = m + jnp.log(s)                     # softmax stats, 1 plane


def _class_partial_kernel(x_ref, lse_ref, lab_ref, up_ref, dn_ref, out_ref):
    """Per-class partial sums for one H-tile (all batches resident).

    For every class c emits [interior, sum(t), sum(score*t), sum(score^2)]
    broadcast over 128 lanes, where
      t        = (label == c)
      interior = #pixels with t==1 whose 4-neighbour cross is all c
                 (exactly the pixels the reference zeroes via Y == 5)
      score    = softmax(logits)[c] = exp(logit_c - logsumexp_c).
    """
    lse = lse_ref[...]                                # (B, TH, W) f32
    lab = lab_ref[...]                                # (B, TH, W) i32 labels
    B, TH, W = lab.shape
    C = out_ref.shape[0]

    rows = jax.lax.broadcasted_iota(jnp.int32, (B, TH, W), 1)
    cols = jax.lax.broadcasted_iota(jnp.int32, (B, TH, W), 2)
    uh = jnp.broadcast_to(up_ref[...].reshape(B, 1, W), (B, TH, W))
    dn = jnp.broadcast_to(dn_ref[...].reshape(B, 1, W), (B, TH, W))

    # 4-neighbour label planes: XLU rolls + VPU selects for border/halo rows.
    up_lab = jnp.where(rows == 0, uh, pltpu.roll(lab, shift=1, axis=1))
    dn_lab = jnp.where(rows == TH - 1, dn, pltpu.roll(lab, shift=TH - 1, axis=1))
    lf_lab = jnp.where(cols == 0, -1, pltpu.roll(lab, shift=1, axis=2))
    rt_lab = jnp.where(cols == W - 1, -1, pltpu.roll(lab, shift=W - 1, axis=2))

    for c in range(C):                                # static unroll, C small
        is_c = lab == c
        t = is_c.astype(jnp.float32)
        interior = jnp.sum((is_c & (up_lab == c) & (dn_lab == c)
                            & (lf_lab == c) & (rt_lab == c)).astype(jnp.float32))
        s_cnt = jnp.sum(t)
        score = jnp.exp(x_ref[:, c, :, :] - lse)      # softmax prob of class c
        inter = jnp.sum(score * t)
        z_sum = jnp.sum(score * score)
        out_ref[c] = jnp.concatenate(
            [jnp.full((1, 128), interior, jnp.float32),
             jnp.full((1, 128), s_cnt, jnp.float32),
             jnp.full((1, 128), inter, jnp.float32),
             jnp.full((1, 128), z_sum, jnp.float32)], axis=0)


def boundary_dou_loss(inputs, target, *, block_h=None, block_hw=None):
    """inputs: (B, C, H, W) float logits; target: (B, H, W) int class labels."""
    assert inputs.ndim == 4 and target.ndim == 3
    B, C, H, W = inputs.shape
    x = inputs.astype(jnp.float32)
    tgt = target.astype(jnp.int32)
    HW = H * W

    # ---- Pass 1: per-pixel log-sum-exp over channels (softmax stats) ----
    t_hw = block_hw if block_hw is not None else _pick_hw_tile(HW)
    assert HW % t_hw == 0
    x_flat = x.reshape(B, C, HW)
    lse_flat = pl.pallas_call(
        _lse_kernel,
        out_shape=jax.ShapeDtypeStruct((B, 1, HW), jnp.float32),
        grid=(B, HW // t_hw),
        in_specs=[pl.BlockSpec((None, C, t_hw), lambda b, j: (b, 0, j))],
        out_specs=pl.BlockSpec((None, 1, t_hw), lambda b, j: (b, 0, j)),
        compiler_params=pltpu.CompilerParams(
            dimension_semantics=("parallel", "parallel")),
    )(x_flat)
    lse = lse_flat.reshape(B, H, W)

    # ---- Pass 2: per (H-tile, class) partial sums ------------------------
    th = block_h if block_h is not None else _pick_block_h(B, C, H, W)
    assert H % th == 0
    kh = H // th

    # One up/down halo row of labels per H-tile (tiny XLA ops).  Border rows
    # use -1 so they never match a class id (== zero padding in the ref conv).
    neg_row = jnp.full((B, 1, W), -1, jnp.int32)
    up_halo = jnp.concatenate(
        [neg_row, tgt[:, th - 1::th, :][:, :kh - 1, :]], axis=1)   # (B, kh, W)
    dn_halo = jnp.concatenate(
        [tgt[:, th::th, :], neg_row], axis=1)                      # (B, kh, W)
    up_halo = jnp.moveaxis(up_halo, 1, 0)                          # (kh, B, W)
    dn_halo = jnp.moveaxis(dn_halo, 1, 0)

    parts = pl.pallas_call(
        _class_partial_kernel,
        out_shape=jax.ShapeDtypeStruct((kh, C, 4, 128), jnp.float32),
        grid=(kh,),
        in_specs=[
            pl.BlockSpec((B, C, th, W), lambda k: (0, 0, k, 0)),   # logits
            pl.BlockSpec((B, th, W), lambda k: (0, k, 0)),         # lse plane
            pl.BlockSpec((B, th, W), lambda k: (0, k, 0)),         # labels
            pl.BlockSpec((None, B, W), lambda k: (k, 0, 0)),       # up halo row
            pl.BlockSpec((None, B, W), lambda k: (k, 0, 0)),       # down halo row
        ],
        out_specs=pl.BlockSpec((None, C, 4, 128), lambda k: (k, 0, 0, 0)),
        compiler_params=pltpu.CompilerParams(
            dimension_semantics=("parallel",)),
    )(x, lse, tgt, up_halo, dn_halo)

    # ---- Finalize: tiny reductions + alpha/loss formula in the wrapper ---
    sums = parts[:, :, :, 0].sum(axis=0)               # (C, 4)
    interior, s_cnt, inter, z_sum = (sums[:, 0], sums[:, 1],
                                     sums[:, 2], sums[:, 3])
    smooth = jnp.float32(_SMOOTH)
    c_cnt = s_cnt - interior                           # boundary pixel count
    alpha = 1.0 - (c_cnt + smooth) / (s_cnt + smooth)
    alpha = jnp.minimum(2.0 * alpha - 1.0, 0.8)
    y_sum = s_cnt                                      # target is a 0/1 mask
    loss = (z_sum + y_sum - 2.0 * inter + smooth) / (
        z_sum + y_sum - (1.0 + alpha) * inter + smooth)
    return jnp.mean(loss)


def _reference_loss(inputs, target):
    """Pure-JAX reference matching the PyTorch module semantics."""
    B, C, H, W = inputs.shape
    probs = jax.nn.softmax(inputs, axis=1)
    smooth = 1e-5
    total = 0.0
    for i in range(C):
        score = probs[:, i]
        t = (target == i).astype(jnp.float32)
        tp = jnp.pad(t, ((0, 0), (1, 1), (1, 1)))
        Y = (tp[:, 1:-1, 1:-1] + tp[:, :-2, 1:-1] + tp[:, 2:, 1:-1]
             + tp[:, 1:-1, :-2] + tp[:, 1:-1, 2:])
        Y = Y * t
        Y = jnp.where(Y == 5, 0.0, Y)
        Ccnt = jnp.count_nonzero(Y).astype(jnp.float32)
        S = jnp.count_nonzero(t).astype(jnp.float32)
        alpha = 1 - (Ccnt + smooth) / (S + smooth)
        alpha = 2 * alpha - 1
        alpha = jnp.minimum(alpha, 0.8)
        inter = jnp.sum(score * t)
        y_sum = jnp.sum(t * t)
        z_sum = jnp.sum(score * score)
        total += (z_sum + y_sum - 2 * inter + smooth) / (
            z_sum + y_sum - (1 + alpha) * inter + smooth)
    return total / C


if __name__ == "__main__":
    key = jax.random.PRNGKey(0)
    k1, k2 = jax.random.split(key)
    # Small shapes; W = 128 keeps the lane axis at the native width so the
    # XLU roll / iota paths are exercised in their supported configuration.
    B, C, H, W = 2, 4, 16, 128
    inputs = jax.random.normal(k1, (B, C, H, W), dtype=jnp.float32)
    target = jax.random.randint(k2, (B, H, W), 0, C, dtype=jnp.int32)

    # block_h=8 -> 2 H-tiles, so the halo/seam path is validated vs the ref.
    loss = jax.block_until_ready(boundary_dou_loss(inputs, target, block_h=8))
    ref = jax.block_until_ready(_reference_loss(inputs, target))

    if not np.allclose(np.asarray(loss), np.asarray(ref), rtol=1e-5, atol=1e-5):
        raise AssertionError(f"kernel/ref mismatch: {loss} vs {ref}")
    print("KERNEL_OK")
</pallas_src>

<mosaic_0001>
module attributes {stable_mosaic.version = 11 : i64} {
  func.func @_lse_kernel(%arg0: i32, %arg1: i32, %arg2: memref<1x4x2048xf32, #tpu.memory_space<vmem>>, %arg3: memref<1x1x2048xf32, #tpu.memory_space<vmem>>) attributes {dimension_semantics = [#tpu.dimension_semantics<parallel>, #tpu.dimension_semantics<parallel>], iteration_bounds = array<i64: 2, 1>, scalar_prefetch = 0 : i64, scratch_operands = 0 : i64, tpu.core_type = #tpu.core_type<tc>, window_params = [{transform_indices = @transform_0, window_bounds = array<i64: 1, 4, 2048>}, {transform_indices = @transform_1, window_bounds = array<i64: 1, 1, 2048>}]} {
    %c0 = arith.constant 0 : index
    %c0_0 = arith.constant 0 : index
    %c0_1 = arith.constant 0 : index
    %0 = vector.load %arg2[%c0, %c0_0, %c0_1] : memref<1x4x2048xf32, #tpu.memory_space<vmem>>, vector<1x4x2048xf32>
    %1 = vector.shape_cast %0 : vector<1x4x2048xf32> to vector<4x2048xf32>
    %cst = arith.constant dense<0xFF800000> : vector<2048xf32>
    %2 = vector.multi_reduction <maximumf>, %1, %cst [0] : vector<4x2048xf32> to vector<2048xf32>
    %3 = vector.shape_cast %2 : vector<2048xf32> to vector<1x2048xf32>
    %4 = vector.broadcast %3 : vector<1x2048xf32> to vector<4x2048xf32>
    %5 = arith.subf %1, %4 : vector<4x2048xf32>
    %6 = math.exp %5 : vector<4x2048xf32>
    %cst_2 = arith.constant dense<0.000000e+00> : vector<2048xf32>
    %7 = vector.multi_reduction <add>, %6, %cst_2 [0] : vector<4x2048xf32> to vector<2048xf32>
    %8 = vector.shape_cast %7 : vector<2048xf32> to vector<1x2048xf32>
    %9 = math.log %8 : vector<1x2048xf32>
    %10 = arith.addf %3, %9 : vector<1x2048xf32>
    %c0_3 = arith.constant 0 : index
    %c0_4 = arith.constant 0 : index
    %c0_5 = arith.constant 0 : index
    %11 = vector.load %arg3[%c0_3, %c0_4, %c0_5] : memref<1x1x2048xf32, #tpu.memory_space<vmem>>, vector<1x1x2048xf32>
    %12 = vector.shape_cast %11 : vector<1x1x2048xf32> to vector<1x2048xf32>
    %13 = vector.shape_cast %10 : vector<1x2048xf32> to vector<1x1x2048xf32>
    tpu.vector_store %arg3[%c0_3, %c0_4, %c0_5], %13 {strides = array<i32>} : memref<1x1x2048xf32, #tpu.memory_space<vmem>>, vector<1x1x2048xf32>,
    return
  }
  func.func @transform_0(%arg0: i32, %arg1: i32) -> (i32, i32, i32) {
    %c0_i32 = arith.constant 0 : i32
    %c0_i32_0 = arith.constant 0 : i32
    return %arg0, %c0_i32, %arg1 : i32, i32, i32
  }
  func.func @transform_1(%arg0: i32, %arg1: i32) -> (i32, i32, i32) {
    %c0_i32 = arith.constant 0 : i32
    %c0_i32_0 = arith.constant 0 : i32
    return %arg0, %c0_i32, %arg1 : i32, i32, i32
  }
}

</mosaic_0001>

<bundles_post_ra>
// kernel: tpu_custom_call.1
= control target key start
LH: loop header
LB: loop body
LE: loop exit
PB: predicated region body
PF: predicated region fallthrough
CT: control target
= control target key end

     0   :  { %6 = vsyncpa [#allocation3], 0  ;;  %s1292_s0 = inlined_call_operand.hbm [shape: f32[2,4,2048], index: 0, kind: input, shape index: {}]   ;;  %s1293_s1 = inlined_call_operand.hbm [shape: f32[2,1,2048], index: 1, kind: output, shape index: {}]  }
   0x1   :  { %8 = vsyncpa [#allocation3 + $0x1], 0 }
   0x2   :  { %9 = vsyncpa [#allocation4], 0 }
   0x3   :  { %11 = vsyncpa [#allocation4 + $0x1], 0  ;;  %s1006_s6 = smov 0   ;;  %s1008_s7 = smov 0  }
   0x4   :  { %s1010_s8 = smov 0   ;;  %s1012_s9 = smov 0  }
   0x5   :  { %s1014_s10 = smov 0   ;;  %s1016_s11 = smov 0  }
   0x6 LB: > { %s757_s12 = sadd.s32 4294967295, %s994_s11   ;;  %s758_s13 = sadd.s32 4294967294, %s994_s11   ;;  %s994_s11 = sphi %s1016_s11, %s17_s11   ;;  %s990_s10 = sphi %s1014_s10, %s1302_s10   ;;  %s986_s9 = sphi %s1012_s9, %s1301_s9   ;;  %s982_s8 = sphi %s1010_s8, %s1300_s8   ;;  %s978_s7 = sphi %s1008_s7, %s1299_s7   ;;  %s974_s6 = sphi %s1006_s6, %s1298_s6  }
   0x7   : > { %s29_s14 = sadd.s32 1, %s990_s10  ;;  %s38_s15 = sadd.s32 1, %s982_s8 }
   0x8   : > { %p31_p0 = scmp.ge.s32.totalorder %s29_s14, 2  ;;  %p45_p1 = scmp.ne.s32.totalorder %s982_s8, %s978_s7 }
   0x9   : > { %p46_p2 = scmp.eq.s32.totalorder %s994_s11, 0  ;;  %p51_p3 = scmp.ne.s32.totalorder %s978_s7, %s974_s6 }
   0xa   : > { %s1304_s14 = smov (%p31_p0, %s29_s14), 0  ;;  %p52_p5 = scmp.eq.s32.totalorder %s757_s12, 0 }
   0xb   : > { %p1047_p4 = por %p46_p2, %p45_p1  ;;  %s33_s17 = ssub.s32 %s990_s10, %s1304_s14 }
   0xc   : > { %p77_p6 = scmp.eq.s32.totalorder %s757_s12, 1  ;;  %p36_p7 = scmp.eq.s32.totalorder %s33_s17, 0 }
   0xd   : > { %p1053_p8 = por %p52_p5, %p51_p3  ;;  %p83_p10 = scmp.eq.s32.totalorder %s758_s13, 1 }
   0xe   : > { %p1057_p9 = por %p77_p6, %p45_p1  ;;  %p760_p12 = scmp.ge.s32.totalorder %s994_s11, 2 }
   0xf   : > { %s1062_s20 = scalar_select %p36_p7, %s982_s8, %s38_s15  }
  0x10   : > { %p1064_p11 = por %p83_p10, %p51_p3  ;;  %p784_p13 = scmp.lt.s32.totalorder %s994_s11, 2 }
  0x11   : > { %s103_s22 = sand.u32 1, %s982_s8   ;;  %s771_s24 = sshll.u32 %s990_s10, 6 }
  0x12   : > { %s761_s23 = sshll.u32 %s103_s22, 6  ;;  %s114_s27 = scalar_lea.hbm %s1292_s0, %s771_s24 }
  0x13   : > { %s107_s28 = scalar_lea.vmem [#allocation2], %s761_s23  ;;  %s116_s30 = sshll.u32 %s114_s27, 4  ;;  %s117_s30 = int_to_ptr.hbm [resolvable:$true] %s116_s30 }
  0x14   : > { %s118_s29 = sshll.u32 %s107_s28, 4  ;;  %p777_p0 = pnand %p784_p13, %p1047_p4  ;;  %s119_s29 = int_to_ptr.vmem [resolvable:$true] %s118_s29 }
  0x15   : > { %p764_p1 = scmp.ge.s32.totalorder %s994_s11, 1  ;;  %p123_p2 = scmp.lt.s32.totalorder %s994_s11, 3 }
  0x16   : > { %s104_s2 = scalar_lea.sflag [#allocation3], %s103_s22 }
  0x17   : > { %779 = dma.hbm_to_vmem [thread:$0]  (!%p777_p0), %s117_s30, 1024, %s119_s29, %s104_s2  }
  0x18   : > { %p124_p3 = pnand %p764_p1, %p123_p2 }
  0x19   : > { %s1080_s3 = sand.u32 (!%p124_p3), 1, %s978_s7  }
  0x1a   : > { %127 = sbr.rel (%p124_p3) target bundleno = 145 (0x91), region = 24  ;;  %s765_s4 = sshll.u32 (!%p124_p3), %s1080_s3, 6 }
  0x1b   : > { %s130_s5 = scalar_lea.sflag (!%p124_p3), [#allocation3], %s1080_s3  ;;  %s1084_s12 = scalar_lea.vmem (!%p124_p3), [#allocation2], %s765_s4 }
  0x1f   : > { %965 = dma.done.wait (%p1053_p8), %s130_s5, 1024  }
  0x20   : > { %967 = vsyncadd (%p1053_p8), %s130_s5, 4294966272  ;;  %v1091_v0 = vld [vmem:[%s1084_s12] sm:$0xff]  ;;  %v1094_v1 = vld [vmem:[%s1084_s12 + $0x8] sm:$0xff]  ;;  %vm214_vm0 = vcmask 1043456   ;;  %vm632_vm1 = vcmask 1040384   ;;  %vm634_vm2 = vcmask 1042434  }
  0x21   : > { %v1097_v2 = vld [vmem:[%s1084_s12 + $0x10] sm:$0xff]  ;;  %171 = vst [vmem:[#allocation1] ss:$2 sm:$0xff] %v1091_v0  ;;  %v1101_v3 = vld [vmem:[%s1084_s12 + $0x18] sm:$0xff]  ;;  %v1111_v16 = vld [vmem:[%s1084_s12 + $0x20] sm:$0xff]  ;;  %vm636_vm3 = vcmask 1041408  }
  0x22   : > { %173 = vst [vmem:[#allocation1 + $0x10] ss:$2 sm:$0xff] %v1094_v1  ;;  %v1115_v22 = vld [vmem:[%s1084_s12 + $0x28] sm:$0xff]  ;;  %v1119_v27 = vld [vmem:[%s1084_s12 + $0x30] sm:$0xff]  ;;  %v1125_v37 = vld [vmem:[%s1084_s12 + $0x38] sm:$0xff]  ;;  %vm638_vm4 = vcmask 1044484  }
  0x23   : > { %175 = vst [vmem:[#allocation1 + $0x20] ss:$2 sm:$0xff] %v1097_v2  ;;  %vm640_vm5 = vcmask 1046534   ;;  %vm642_vm6 = vcmask 1045508   ;;  %s766_s13 = sshll.u32 %s1080_s3, 4  ;;  %s768_s16 = sshll.u32 %s986_s9, 4 }
  0x24   : > { %177 = vst [vmem:[#allocation1 + $0x30] ss:$2 sm:$0xff] %v1101_v3  ;;  %s1234_s15 = scalar_lea.vmem [#allocation5], %s766_s13  ;;  %s669_s9 = scalar_lea.hbm %s1293_s1, %s768_s16 }
  0x25   : > { %s671_s22 = sshll.u32 %s1234_s15, 4  ;;  %s673_s23 = sshll.u32 %s669_s9, 4  ;;  %s672_s22 = int_to_ptr.vmem [resolvable:$true] %s671_s22  ;;  %s674_s23 = int_to_ptr.hbm [resolvable:$true] %s673_s23 }
  0x26   : > { %s657_s24 = scalar_lea.sflag [#allocation4], %s1080_s3  ;;  %s926_s25 = sshra.s32 %s674_s23, 4  ;;  %s927_s25 = int_to_ptr.hbm [resolvable:$true] %s926_s25 }
  0x27   : > { %s928_s26 = scalar_lea.hbm %s927_s25, 16  ;;  %s932_s29 = scalar_lea.hbm %s1293_s1, 32 }
  0x28   : > { %v178_v4 = vld.sshfl [vmem:[#allocation1] sm:$0xff pattern:$0x75316420]  ;;  %v179_v5 = vld.sshfl [vmem:[#allocation1 + $0x8] sm:$0xff pattern:$0x75316420]  ;;  %p929_p4 = scmp.ne.s32.totalorder %s927_s25, %s928_s26  ;;  %p933_p7 = scmp.lt.s32.totalorder %s927_s25, %s1293_s1 }
  0x29   : > { %v215_v6 = vsel %vm214_vm0, %v178_v4, -inf  ;;  %v222_v7 = vsel %vm214_vm0, %v179_v5, -inf  ;;  %v180_v8 = vld.sshfl [vmem:[#allocation1 + $0x10] sm:$0xff pattern:$0x75316420]  ;;  %p934_p8 = scmp.lt.s32.totalorder %s932_s29, %s928_s26 }
  0x2a   : > { %v216_v9 = vrot.slane %v215_v6, 4  ;;  %v223_v10 = vrot.slane %v222_v7, 4  ;;  %v181_v11 = vld.sshfl [vmem:[#allocation1 + $0x18] sm:$0xff pattern:$0x75316420]  ;;  %v229_v12 = vsel %vm214_vm0, %v180_v8, -inf  ;;  %p930_p5 = pnand %p929_p4, %p1057_p9 }
  0x2b   : > { %v230_v13 = vrot.slane %v229_v12, 4  ;;  %v236_v14 = vsel %vm214_vm0, %v181_v11, -inf  ;;  %v182_v15 = vld.sshfl [vmem:[#allocation1 + $0x20] sm:$0xff pattern:$0x75316420]  ;;  %p935_p10 = por %p934_p8, %p933_p7 }
  0x2c   : > { %v217_v17 = vmax.f32 %v215_v6, %v216_v9  ;;  %v224_v18 = vmax.f32 %v222_v7, %v223_v10  ;;  %v237_v19 = vrot.slane %v236_v14, 4  ;;  %v183_v20 = vld.sshfl [vmem:[#allocation1 + $0x28] sm:$0xff pattern:$0x75316420]  ;;  %v243_v21 = vsel %vm214_vm0, %v182_v15, -inf  ;;  %p931_p6 = pneg %p930_p5 }
  0x2d   : > { %v231_v23 = vmax.f32 %v229_v12, %v230_v13  ;;  %v244_v24 = vrot.slane %v243_v21, 4  ;;  %v250_v25 = vsel %vm214_vm0, %v183_v20, -inf  ;;  %v184_v26 = vld.sshfl [vmem:[#allocation1 + $0x30] sm:$0xff pattern:$0x75316420] }
  0x2e   : > { %v218_v28 = vrot.slane %v217_v17, 2  ;;  %v225_v29 = vrot.slane %v224_v18, 2  ;;  %v238_v30 = vmax.f32 %v236_v14, %v237_v19  ;;  %v251_v31 = vrot.slane %v250_v25, 4  ;;  %v185_v32 = vld.sshfl [vmem:[#allocation1 + $0x38] sm:$0xff pattern:$0x75316420]  ;;  %p936_p13 = pnand %p935_p10, %p931_p6 }
  0x2f   : > { %v232_v33 = vrot.slane %v231_v23, 2  ;;  %v245_v34 = vmax.f32 %v243_v21, %v244_v24  ;;  %v257_v35 = vsel %vm214_vm0, %v184_v26, -inf  ;;  %v264_v36 = vsel %vm214_vm0, %v185_v32, -inf  ;;  %186 = vst [vmem:[#allocation1] ss:$2 sm:$0xff] %v1111_v16 }
  0x30   : > { %v219_v38 = vmax.f32 %v217_v17, %v218_v28  ;;  %v226_v39 = vmax.f32 %v224_v18, %v225_v29  ;;  %v239_v40 = vrot.slane %v238_v30, 2  ;;  %v252_v41 = vmax.f32 %v250_v25, %v251_v31  ;;  %187 = vst [vmem:[#allocation1 + $0x10] ss:$2 sm:$0xff] %v1115_v22 }
  0x31   : > { %v233_v42 = vmax.f32 %v231_v23, %v232_v33  ;;  %v246_v43 = vrot.slane %v245_v34, 2  ;;  %v258_v44 = vrot.slane %v257_v35, 4  ;;  %v265_v45 = vrot.slane %v264_v36, 4  ;;  %188 = vst [vmem:[#allocation1 + $0x20] ss:$2 sm:$0xff] %v1119_v27 }
  0x32   : > { %v220_v46 = vrot.slane %v219_v38, 1  ;;  %v227_v47 = vrot.slane %v226_v39, 1  ;;  %v240_v48 = vmax.f32 %v238_v30, %v239_v40  ;;  %v253_v49 = vrot.slane %v252_v41, 2  ;;  %189 = vst [vmem:[#allocation1 + $0x30] ss:$2 sm:$0xff] %v1125_v37 }
  0x33   : > { %v234_v50 = vrot.slane %v233_v42, 1  ;;  %v247_v51 = vmax.f32 %v245_v34, %v246_v43  ;;  %v259_v52 = vmax.f32 %v257_v35, %v258_v44  ;;  %v266_v53 = vmax.f32 %v264_v36, %v265_v45 }
  0x34   : > { %v1130_v54 = vmax.f32 %v226_v39, %v227_v47  ;;  %v241_v55 = vrot.slane %v240_v48, 1  ;;  %v254_v56 = vmax.f32 %v252_v41, %v253_v49  ;;  %v1132_v57 = vmax.f32 %v219_v38, %v220_v46 }
  0x35   : > { %v248_v58 = vrot.slane %v247_v51, 1  ;;  %v260_v59 = vrot.slane %v259_v52, 2  ;;  %v267_v60 = vrot.slane %v266_v53, 2  ;;  %v1135_v62 = vmax.f32 %v233_v42, %v234_v50 }
  0x36   : > { %v343_v61 = vrot.slane %v1130_v54, 4  ;;  %v1137_v63 = vmax.f32 %v240_v48, %v241_v55  ;;  %v255_v4 = vrot.slane %v254_v56, 1  ;;  %v190_v5 = vld.sshfl [vmem:[#allocation1] sm:$0xff pattern:$0x75316420] }
  0x37   : > { %v1139_v6 = vmax.f32 %v247_v51, %v248_v58  ;;  %v261_v7 = vmax.f32 %v259_v52, %v260_v59  ;;  %v268_v8 = vmax.f32 %v266_v53, %v267_v60  ;;  %v191_v9 = vld.sshfl [vmem:[#allocation1 + $0x8] sm:$0xff pattern:$0x75316420]  ;;  %v271_v10 = vsel %vm214_vm0, %v190_v5, -inf }
  0x38   : > { %v351_v11 = vsel %vm214_vm0, %v1132_v57, %v343_v61  ;;  %v344_v12 = vrot.slane %v1137_v63, 4  ;;  %v1145_v13 = vmax.f32 %v254_v56, %v255_v4  ;;  %v272_v14 = vrot.slane %v271_v10, 4  ;;  %v192_v20 = vld.sshfl [vmem:[#allocation1 + $0x10] sm:$0xff pattern:$0x75316420] }
  0x39   : > { %v367_v15 = vsub.f32 %v1091_v0, %v351_v11  ;;  %v262_v17 = vrot.slane %v261_v7, 1  ;;  %v269_v18 = vrot.slane %v268_v8, 1  ;;  %v278_v19 = vsel %vm214_vm0, %v191_v9, -inf  ;;  %v193_v0 = vld.sshfl [vmem:[#allocation1 + $0x18] sm:$0xff pattern:$0x75316420] }
  0x3a   : > { %v352_v21 = vsel %vm214_vm0, %v1135_v62, %v344_v12  ;;  %v345_v23 = vrot.slane %v1145_v13, 4  ;;  %v273_v24 = vmax.f32 %v271_v10, %v272_v14  ;;  %v279_v25 = vrot.slane %v278_v19, 4  ;;  %v194_v39 = vld.sshfl [vmem:[#allocation1 + $0x20] sm:$0xff pattern:$0x75316420] }
  0x3b   : > { %v375_v26 = vmul.f32 1.442695, %v367_v15  ;;  %v368_v28 = vsub.f32 %v1094_v1, %v352_v21  ;;  %v1153_v29 = vmax.f32 %v261_v7, %v262_v17  ;;  %v1155_v30 = vmax.f32 %v268_v8, %v269_v18  ;;  %v195_v43 = vld.sshfl [vmem:[#allocation1 + $0x28] sm:$0xff pattern:$0x75316420] }
  0x3c   : > { %v353_v31 = vsel %vm214_vm0, %v1139_v6, %v345_v23  ;;  %v274_v32 = vrot.slane %v273_v24, 2  ;;  %v280_v33 = vmax.f32 %v278_v19, %v279_v25  ;;  %v285_v34 = vsel %vm214_vm0, %v192_v20, -inf  ;;  %v196_v50 = vld.sshfl [vmem:[#allocation1 + $0x30] sm:$0xff pattern:$0x75316420] }
  0x3d   : > { %834 = vpow2.f32 %v375_v26  ;;  %v377_v35 = vmul.f32 1.442695, %v368_v28  ;;  %v369_v36 = vsub.f32 %v1097_v2, %v353_v31  ;;  %v346_v38 = vrot.slane %v1155_v30, 4  ;;  %v197_v55 = vld.sshfl [vmem:[#allocation1 + $0x38] sm:$0xff pattern:$0x75316420] }
  0x3e   : > { %v275_v1 = vmax.f32 %v273_v24, %v274_v32  ;;  %v281_v40 = vrot.slane %v280_v33, 2  ;;  %v286_v41 = vrot.slane %v285_v34, 4  ;;  %v292_v42 = vsel %vm214_vm0, %v193_v0, -inf }
  0x3f   : > { %836 = vpow2.f32 %v377_v35  ;;  %v379_v44 = vmul.f32 1.442695, %v369_v36  ;;  %v354_v45 = vsel %vm214_vm0, %v1153_v29, %v346_v38  ;;  %v293_v46 = vrot.slane %v292_v42, 4 }
  0x40   : > { %v370_v47 = vsub.f32 %v1101_v3, %v354_v45  ;;  %v276_v48 = vrot.slane %v275_v1, 1  ;;  %v282_v49 = vmax.f32 %v280_v33, %v281_v40  ;;  %v287_v2 = vmax.f32 %v285_v34, %v286_v41 }
  0x41   : > { %838 = vpow2.f32 %v379_v44  ;;  %v294_v51 = vmax.f32 %v292_v42, %v293_v46  ;;  %v299_v52 = vsel %vm214_vm0, %v194_v39, -inf  ;;  %v306_v53 = vsel %vm214_vm0, %v195_v43, -inf }
  0x42   : > { %v381_v56 = vmul.f32 1.442695, %v370_v47  ;;  %v1168_v58 = vmax.f32 %v275_v1, %v276_v48  ;;  %v283_v59 = vrot.slane %v282_v49, 1  ;;  %v288_v60 = vrot.slane %v287_v2, 2 }
  0x43   : > { %v835_v61 = vpop.eup %834  ;;  %v295_v4 = vrot.slane %v294_v51, 2  ;;  %v300_v5 = vrot.slane %v299_v52, 4  ;;  %v307_v3 = vrot.slane %v306_v53, 4  ;;  %v313_v7 = vsel %vm214_vm0, %v196_v50, -inf }
  0x44   : > { %840 = vpow2.f32 %v381_v56  ;;  %v1171_v8 = vmax.f32 %v282_v49, %v283_v59  ;;  %399 = vst [vmem:[#allocation1] ss:$2 sm:$0xff] %v835_v61  ;;  %v289_v9 = vmax.f32 %v287_v2, %v288_v60  ;;  %v314_v10 = vrot.slane %v313_v7, 4 }
  0x45   : > { %v837_v11 = vpop.eup %836  ;;  %v296_v12 = vmax.f32 %v294_v51, %v295_v4  ;;  %v301_v14 = vmax.f32 %v299_v52, %v300_v5  ;;  %v308_v15 = vmax.f32 %v306_v53, %v307_v3  ;;  %v320_v17 = vsel %vm214_vm0, %v197_v55, -inf }
  0x46   : > { %v347_v18 = vrot.slane %v1171_v8, 4  ;;  %v290_v19 = vrot.slane %v289_v9, 1  ;;  %401 = vst [vmem:[#allocation1 + $0x10] ss:$2 sm:$0xff] %v837_v11  ;;  %v315_v20 = vmax.f32 %v313_v7, %v314_v10  ;;  %v321_v21 = vrot.slane %v320_v17, 4 }
  0x47   : > { %v839_v23 = vpop.eup %838  ;;  %v297_v24 = vrot.slane %v296_v12, 1  ;;  %v302_v25 = vrot.slane %v301_v14, 2  ;;  %v309_v26 = vrot.slane %v308_v15, 2 }
  0x48   : > { %v355_v28 = vsel %vm214_vm0, %v1168_v58, %v347_v18  ;;  %403 = vst [vmem:[#allocation1 + $0x20] ss:$2 sm:$0xff] %v839_v23  ;;  %v316_v0 = vrot.slane %v315_v20, 2  ;;  %v322_v31 = vmax.f32 %v320_v17, %v321_v21  ;;  %v1180_v38 = vmax.f32 %v289_v9, %v290_v19 }
  0x49   : > { %v371_v32 = vsub.f32 %v1111_v16, %v355_v28  ;;  %v1178_v33 = vmax.f32 %v296_v12, %v297_v24  ;;  %v303_v34 = vmax.f32 %v301_v14, %v302_v25  ;;  %v310_v35 = vmax.f32 %v308_v15, %v309_v26 }
  0x4a   : > { %v841_v36 = vpop.eup %840  ;;  %v317_v39 = vmax.f32 %v315_v20, %v316_v0  ;;  %v323_v1 = vrot.slane %v322_v31, 2 }
  0x4b   : > { %v383_v40 = vmul.f32 1.442695, %v371_v32  ;;  %v348_v41 = vrot.slane %v1178_v33, 4  ;;  %v304_v42 = vrot.slane %v303_v34, 1  ;;  %v311_v43 = vrot.slane %v310_v35, 1 }
  0x4c   : > { %v318_v44 = vrot.slane %v317_v39, 1  ;;  %v324_v45 = vmax.f32 %v322_v31, %v323_v1  ;;  %405 = vst [vmem:[#allocation1 + $0x30] ss:$2 sm:$0xff] %v841_v36  ;;  %v406_v46 = vld.sshfl [vmem:[#allocation1] sm:$0xff pattern:$0x75316420] }
  0x4d   : > { %842 = vpow2.f32 %v383_v40  ;;  %v356_v16 = vsel %vm214_vm0, %v1180_v38, %v348_v41  ;;  %v1185_v47 = vmax.f32 %v310_v35, %v311_v43  ;;  %v407_v48 = vld.sshfl [vmem:[#allocation1 + $0x8] sm:$0xff pattern:$0x75316420]  ;;  %v408_v49 = vld.sshfl [vmem:[#allocation1 + $0x10] sm:$0xff pattern:$0x75316420]  ;;  %v1189_v53 = vmax.f32 %v303_v34, %v304_v42 }
  0x4e   : > { %v372_v2 = vsub.f32 %v1115_v22, %v356_v16  ;;  %v325_v50 = vrot.slane %v324_v45, 1  ;;  %v409_v51 = vld.sshfl [vmem:[#allocation1 + $0x18] sm:$0xff pattern:$0x75316420]  ;;  %v442_v52 = vsel %vm214_vm0, %v406_v46, 0.0  ;;  %v449_v59 = vsel %vm214_vm0, %v407_v48, 0.0 }
  0x4f   : > { %v349_v55 = vrot.slane %v1185_v47, 4  ;;  %v443_v56 = vrot.slane %v442_v52, 4  ;;  %v1193_v61 = vmax.f32 %v317_v39, %v318_v44  ;;  %v450_v5 = vrot.slane %v449_v59, 4  ;;  %v410_v12 = vld.sshfl [vmem:[#allocation1 + $0x20] sm:$0xff pattern:$0x75316420] }
  0x50   : > { %v385_v60 = vmul.f32 1.442695, %v372_v2  ;;  %v1195_v4 = vmax.f32 %v324_v45, %v325_v50  ;;  %v456_v7 = vsel %vm214_vm0, %v408_v49, 0.0  ;;  %v463_v9 = vsel %vm214_vm0, %v409_v51, 0.0 }
  0x51   : > { %v357_v22 = vsel %vm214_vm0, %v1189_v53, %v349_v55  ;;  %v444_v3 = vadd.f32 %v443_v56, %v442_v52  ;;  %v451_v14 = vadd.f32 %v450_v5, %v449_v59  ;;  %v411_v17 = vld.sshfl [vmem:[#allocation1 + $0x28] sm:$0xff pattern:$0x75316420]  ;;  %v457_v24 = vrot.slane %v456_v7, 4 }
  0x52   : > { %844 = vpow2.f32 %v385_v60  ;;  %v373_v10 = vsub.f32 %v1119_v27, %v357_v22  ;;  %v350_v11 = vrot.slane %v1195_v4, 4  ;;  %v464_v25 = vrot.slane %v463_v9, 4 }
  0x53   : > { %v843_v15 = vpop.eup %842  ;;  %v445_v20 = vrot.slane %v444_v3, 2  ;;  %v452_v21 = vrot.slane %v451_v14, 2  ;;  %v470_v26 = vsel %vm214_vm0, %v410_v12, 0.0  ;;  %v412_v27 = vld.sshfl [vmem:[#allocation1 + $0x30] sm:$0xff pattern:$0x75316420]  ;;  %v458_v34 = vadd.f32 %v457_v24, %v456_v7 }
  0x54   : > { %v387_v18 = vmul.f32 1.442695, %v373_v10  ;;  %v358_v19 = vsel %vm214_vm0, %v1193_v61, %v350_v11  ;;  %414 = vst [vmem:[#allocation1] ss:$2 sm:$0xff] %v843_v15  ;;  %v471_v31 = vrot.slane %v470_v26, 4  ;;  %v465_v35 = vadd.f32 %v464_v25, %v463_v9 }
  0x55   : > { %v374_v23 = vsub.f32 %v1125_v37, %v358_v19  ;;  %v446_v28 = vadd.f32 %v445_v20, %v444_v3  ;;  %v453_v0 = vadd.f32 %v452_v21, %v451_v14  ;;  %v477_v36 = vsel %vm214_vm0, %v411_v17, 0.0  ;;  %v413_v1 = vld.sshfl [vmem:[#allocation1 + $0x38] sm:$0xff pattern:$0x75316420] }
  0x56   : > { %846 = vpow2.f32 %v387_v18  ;;  %v472_v42 = vadd.f32 %v471_v31, %v470_v26  ;;  %v478_v37 = vrot.slane %v477_v36, 4  ;;  %v459_v43 = vrot.slane %v458_v34, 2 }
  0x57   : > { %v389_v32 = vmul.f32 1.442695, %v374_v23  ;;  %v447_v40 = vrot.slane %v446_v28, 1  ;;  %v454_v41 = vrot.slane %v453_v0, 1  ;;  %v466_v44 = vrot.slane %v465_v35, 2 }
  0x58   : > { %v845_v39 = vpop.eup %844  ;;  %v484_v45 = vsel %vm214_vm0, %v412_v27, 0.0  ;;  %v473_v48 = vrot.slane %v472_v42, 2  ;;  %v479_v49 = vadd.f32 %v478_v37, %v477_v36  ;;  %v460_v2 = vadd.f32 %v459_v43, %v458_v34 }
  0x59   : > { %848 = vpow2.f32 %v389_v32  ;;  %415 = vst [vmem:[#allocation1 + $0x10] ss:$2 sm:$0xff] %v845_v39  ;;  %v448_v46 = vadd.f32 %v447_v40, %v446_v28  ;;  %v455_v16 = vadd.f32 %v454_v41, %v453_v0  ;;  %v467_v50 = vadd.f32 %v466_v44, %v465_v35 }
  0x5a   : > { %v485_v51 = vrot.slane %v484_v45, 4  ;;  %v491_v52 = vsel %vm214_vm0, %v413_v1, 0.0  ;;  %v474_v56 = vadd.f32 %v473_v48, %v472_v42  ;;  %v480_v59 = vrot.slane %v479_v49, 2 }
  0x5b   : > { %v492_v60 = vrot.slane %v491_v52, 4  ;;  %850 = vlog2.f32 %v448_v46  ;;  %v461_v5 = vrot.slane %v460_v2, 1  ;;  %v468_v22 = vrot.slane %v467_v50, 1  ;;  %v418_v17 = vld.sshfl [vmem:[#allocation1] sm:$0xff pattern:$0x75316420] }
  0x5c   : > { %v847_v55 = vpop.eup %846  ;;  %v486_v3 = vadd.f32 %v485_v51, %v484_v45  ;;  %852 = vlog2.f32 %v455_v16  ;;  %v475_v7 = vrot.slane %v474_v56, 1  ;;  %v481_v9 = vadd.f32 %v480_v59, %v479_v49  ;;  %v419_v23 = vld.sshfl [vmem:[#allocation1 + $0x8] sm:$0xff pattern:$0x75316420] }
  0x5d   : > { %416 = vst [vmem:[#allocation1 + $0x20] ss:$2 sm:$0xff] %v847_v55  ;;  %v493_v10 = vadd.f32 %v492_v60, %v491_v52  ;;  %v462_v12 = vadd.f32 %v461_v5, %v460_v2  ;;  %v469_v14 = vadd.f32 %v468_v22, %v467_v50  ;;  %v498_v32 = vsel %vm214_vm0, %v418_v17, 0.0 }
  0x5e   : > { %v487_v15 = vrot.slane %v486_v3, 2  ;;  %v476_v18 = vadd.f32 %v475_v7, %v474_v56  ;;  %v482_v19 = vrot.slane %v481_v9, 1  ;;  %v499_v39 = vrot.slane %v498_v32, 4 }
  0x5f   : > { %v849_v11 = vpop.eup %848  ;;  %v494_v20 = vrot.slane %v493_v10, 2  ;;  %854 = vlog2.f32 %v462_v12  ;;  %v505_v1 = vsel %vm214_vm0, %v419_v23, 0.0 }
  0x60   : > { %417 = vst [vmem:[#allocation1 + $0x30] ss:$2 sm:$0xff] %v849_v11  ;;  %v488_v21 = vadd.f32 %v487_v15, %v486_v3  ;;  %v483_v25 = vadd.f32 %v482_v19, %v481_v9  ;;  %856 = vlog2.f32 %v469_v14  ;;  %v420_v27 = vld.sshfl [vmem:[#allocation1 + $0x10] sm:$0xff pattern:$0x75316420]  ;;  %v506_v37 = vrot.slane %v505_v1, 4 }
  0x61   : > { %v851_v24 = vpop.eup %850  ;;  %v495_v26 = vadd.f32 %v494_v20, %v493_v10  ;;  %858 = vlog2.f32 %v476_v18  ;;  %v421_v42 = vld.sshfl [vmem:[#allocation1 + $0x18] sm:$0xff pattern:$0x75316420]  ;;  %v512_v43 = vsel %vm214_vm0, %v420_v27, 0.0  ;;  %v500_v46 = vadd.f32 %v499_v39, %v498_v32 }
  0x62   : > { %v853_v28 = vpop.eup %852  ;;  %v489_v0 = vrot.slane %v488_v21, 1  ;;  %v555_v31 = vmul.f32 0.6931472, %v851_v24  ;;  %860 = vlog2.f32 %v483_v25  ;;  %v507_v2 = vadd.f32 %v506_v37, %v505_v1 }
  0x63   : > { %v496_v34 = vrot.slane %v495_v26, 1  ;;  %v557_v35 = vmul.f32 0.6931472, %v853_v28  ;;  %v501_v52 = vrot.slane %v500_v46, 2  ;;  %v513_v55 = vrot.slane %v512_v43, 4 }
  0x64   : > { %v490_v36 = vadd.f32 %v489_v0, %v488_v21  ;;  %v586_v45 = vadd.f32 %v555_v31, %v1132_v57  ;;  %v508_v57 = vrot.slane %v507_v2, 2  ;;  %v423_v28 = vld.sshfl [vmem:[#allocation1 + $0x28] sm:$0xff pattern:$0x75316420] }
  0x65   : > { %v497_v40 = vadd.f32 %v496_v34, %v495_v26  ;;  %v587_v41 = vadd.f32 %v557_v35, %v1130_v54  ;;  %v855_v44 = vpop.eup %854  ;;  %v519_v54 = vsel %vm214_vm0, %v421_v42, 0.0  ;;  %v502_v7 = vadd.f32 %v501_v52, %v500_v46 }
  0x66   : > { %862 = vlog2.f32 %v490_v36  ;;  %v857_v16 = vpop.eup %856  ;;  %v559_v48 = vmul.f32 0.6931472, %v855_v44  ;;  %v514_v9 = vadd.f32 %v513_v55, %v512_v43  ;;  %v509_v12 = vadd.f32 %v508_v57, %v507_v2 }
  0x67   : > { %864 = vlog2.f32 %v497_v40  ;;  %v618_v49 = vrot.slane %v587_v41, 7  ;;  %v859_v50 = vpop.eup %858  ;;  %v561_v51 = vmul.f32 0.6931472, %v857_v16  ;;  %v520_v14 = vrot.slane %v519_v54, 4 }
  0x68   : > { %v861_v56 = vpop.eup %860  ;;  %v563_v59 = vmul.f32 0.6931472, %v859_v50  ;;  %v588_v60 = vadd.f32 %v559_v48, %v1135_v62  ;;  %v422_v62 = vld.sshfl [vmem:[#allocation1 + $0x20] sm:$0xff pattern:$0x75316420]  ;;  %v503_v19 = vrot.slane %v502_v7, 1 }
  0x69   : > { %v633_v5 = vsel %vm632_vm1, %v586_v45, %v618_v49  ;;  %v565_v22 = vmul.f32 0.6931472, %v861_v56  ;;  %v589_v3 = vadd.f32 %v561_v51, %v1137_v63  ;;  %v515_v20 = vrot.slane %v514_v9, 2  ;;  %v424_v32 = vld.sshfl [vmem:[#allocation1 + $0x30] sm:$0xff pattern:$0x75316420] }
  0x6a   : > { %v590_v10 = vadd.f32 %v563_v59, %v1139_v6  ;;  %v619_v11 = vrot.slane %v588_v60, 6  ;;  %v510_v25 = vrot.slane %v509_v12, 1  ;;  %v521_v63 = vadd.f32 %v520_v14, %v519_v54  ;;  %v425_v1 = vld.sshfl [vmem:[#allocation1 + $0x38] sm:$0xff pattern:$0x75316420] }
  0x6b   : > { %v591_v17 = vadd.f32 %v565_v22, %v1145_v13  ;;  %v620_v18 = vrot.slane %v589_v3, 5  ;;  %v504_v0 = vadd.f32 %v503_v19, %v502_v7  ;;  %v516_v35 = vadd.f32 %v515_v20, %v514_v9 }
  0x6c   : > { %v863_v15 = vpop.eup %862  ;;  %v621_v24 = vrot.slane %v590_v10, 4  ;;  %v511_v34 = vadd.f32 %v510_v25, %v509_v12  ;;  %v522_v40 = vrot.slane %v521_v63, 2  ;;  %v526_v41 = vsel %vm214_vm0, %v422_v62, 0.0 }
  0x6d   : > { %v865_v21 = vpop.eup %864  ;;  %v567_v23 = vmul.f32 0.6931472, %v863_v15  ;;  %v622_v27 = vrot.slane %v591_v17, 3  ;;  %v635_v6 = vsel %vm634_vm2, %v619_v11, %v620_v18  ;;  %v517_v37 = vrot.slane %v516_v35, 1 }
  0x6e   : > { %v569_v26 = vmul.f32 0.6931472, %v865_v21  ;;  %v637_v13 = vsel %vm636_vm3, %v633_v5, %v635_v6  ;;  %v527_v43 = vrot.slane %v526_v41, 4  ;;  %v533_v44 = vsel %vm214_vm0, %v423_v28, 0.0 }
  0x6f   : > { %v592_v31 = vadd.f32 %v567_v23, %v1153_v29  ;;  %v639_v39 = vsel %vm638_vm4, %v621_v24, %v622_v27  ;;  %v523_v45 = vadd.f32 %v522_v40, %v521_v63  ;;  %v534_v46 = vrot.slane %v533_v44, 4 }
  0x70   : > { %v593_v36 = vadd.f32 %v569_v26, %v1155_v30  ;;  %v540_v16 = vsel %vm214_vm0, %v424_v32, 0.0  ;;  %v518_v48 = vadd.f32 %v517_v37, %v516_v35  ;;  %v528_v49 = vadd.f32 %v527_v43, %v526_v41 }
  0x71   : > { %v623_v42 = vrot.slane %v592_v31, 2  ;;  %v541_v30 = vrot.slane %v540_v16, 4  ;;  %v547_v2 = vsel %vm214_vm0, %v425_v1, 0.0  ;;  %v524_v51 = vrot.slane %v523_v45, 1 }
  0x72   : > { %v624_v29 = vrot.slane %v593_v36, 1  ;;  %v535_v52 = vadd.f32 %v534_v46, %v533_v44  ;;  %v548_v55 = vrot.slane %v547_v2, 4  ;;  %v529_v56 = vrot.slane %v528_v49, 2 }
  0x73   : > { %v542_v59 = vadd.f32 %v541_v30, %v540_v16  ;;  %866 = vlog2.f32 %v504_v0  ;;  %v525_v5 = vadd.f32 %v524_v51, %v523_v45 }
  0x74   : > { %v641_v50 = vsel %vm640_vm5, %v623_v42, %v624_v29  ;;  %v536_v57 = vrot.slane %v535_v52, 2  ;;  %v549_v22 = vadd.f32 %v548_v55, %v547_v2  ;;  %v530_v3 = vadd.f32 %v529_v56, %v528_v49 }
  0x75   : > { %v643_v54 = vsel %vm642_vm6, %v639_v39, %v641_v50  ;;  %v543_v7 = vrot.slane %v542_v59, 2  ;;  %868 = vlog2.f32 %v511_v34 }
  0x76   : > { %v644_v60 = vsel %vm214_vm0, %v637_v13, %v643_v54  ;;  %v537_v9 = vadd.f32 %v536_v57, %v535_v52  ;;  %v550_v10 = vrot.slane %v549_v22, 2  ;;  %870 = vlog2.f32 %v518_v48 }
  0x77   : > { %654 = vst [vmem:[%s1234_s15] sm:$0xff] %v644_v60  ;;  %v531_v11 = vrot.slane %v530_v3, 1  ;;  %v544_v12 = vadd.f32 %v543_v7, %v542_v59  ;;  %872 = vlog2.f32 %v525_v5 }
  0x78   : > { %v538_v14 = vrot.slane %v537_v9, 1  ;;  %v551_v15 = vadd.f32 %v550_v10, %v549_v22 }
  0x79   : > { %v867_v17 = vpop.eup %866  ;;  %v532_v18 = vadd.f32 %v531_v11, %v530_v3  ;;  %v545_v62 = vrot.slane %v544_v12, 1 }
  0x7a   : > { %v539_v19 = vadd.f32 %v538_v14, %v537_v9  ;;  %v552_v20 = vrot.slane %v551_v15, 1  ;;  %v571_v63 = vmul.f32 0.6931472, %v867_v17 }
  0x7b   : > { %v869_v21 = vpop.eup %868  ;;  %v546_v23 = vadd.f32 %v545_v62, %v544_v12  ;;  %874 = vlog2.f32 %v532_v18 }
  0x7c   : > { %v871_v24 = vpop.eup %870  ;;  %v553_v25 = vadd.f32 %v552_v20, %v551_v15  ;;  %v573_v26 = vmul.f32 0.6931472, %v869_v21  ;;  %876 = vlog2.f32 %v539_v19  ;;  %v594_v13 = vadd.f32 %v571_v63, %v1168_v58 }
  0x7d   : > { %v873_v27 = vpop.eup %872  ;;  %v575_v6 = vmul.f32 0.6931472, %v871_v24  ;;  %878 = vlog2.f32 %v546_v23 }
  0x7e   : > { %v577_v28 = vmul.f32 0.6931472, %v873_v27  ;;  %880 = vlog2.f32 %v553_v25  ;;  %v595_v0 = vadd.f32 %v573_v26, %v1171_v8 }
  0x7f   : > { %v596_v31 = vadd.f32 %v575_v6, %v1180_v38 }
  0x80   : > { %v597_v32 = vadd.f32 %v577_v28, %v1178_v33  ;;  %v625_v34 = vrot.slane %v595_v0, 7 }
  0x81   : > { %v875_v35 = vpop.eup %874  ;;  %v626_v36 = vrot.slane %v596_v31, 6 }
  0x82   : > { %v877_v39 = vpop.eup %876  ;;  %v579_v1 = vmul.f32 0.6931472, %v875_v35  ;;  %v627_v40 = vrot.slane %v597_v32, 5  ;;  %v645_v41 = vsel %vm632_vm1, %v594_v13, %v625_v34 }
  0x83   : > { %v879_v42 = vpop.eup %878  ;;  %v581_v37 = vmul.f32 0.6931472, %v877_v39 }
  0x84   : > { %v881_v43 = vpop.eup %880  ;;  %v583_v8 = vmul.f32 0.6931472, %v879_v42  ;;  %v598_v38 = vadd.f32 %v579_v1, %v1189_v53  ;;  %v646_v58 = vsel %vm634_vm2, %v626_v36, %v627_v40 }
  0x85   : > { %v585_v44 = vmul.f32 0.6931472, %v881_v43  ;;  %v599_v33 = vadd.f32 %v581_v37, %v1185_v47  ;;  %v647_v29 = vsel %vm636_vm3, %v645_v41, %v646_v58 }
  0x86   : > { %v600_v45 = vadd.f32 %v583_v8, %v1193_v61  ;;  %v628_v46 = vrot.slane %v598_v38, 4 }
  0x87   : > { %v601_v16 = vadd.f32 %v585_v44, %v1195_v4  ;;  %v629_v48 = vrot.slane %v599_v33, 3 }
  0x88   : > { %v630_v53 = vrot.slane %v600_v45, 2 }
  0x89   : > { %v631_v49 = vrot.slane %v601_v16, 1  ;;  %v648_v47 = vsel %vm638_vm4, %v628_v46, %v629_v48 }
  0x8b   : > { %v649_v30 = vsel %vm640_vm5, %v630_v53, %v631_v49 }
  0x8c   : > { %v650_v61 = vsel %vm642_vm6, %v648_v47, %v649_v30 }
  0x8d   : > { %v651_v2 = vsel %vm214_vm0, %v647_v29, %v650_v61 }
  0x8e   : > { %655 = vst [vmem:[%s1234_s15 + $0x8] sm:$0xff] %v651_v2 }
  0x8f   : > { %939 = shalt.err (!%p936_p13)
}
  0x90   : > { %774 = dma.vmem_to_hbm [thread:$0]  (%p1057_p9), %s672_s22, 256, %s674_s23, %s657_s24  }
  0x91 PF: > { %s685_s3 = sand.u32 1, %s974_s6   ;;  %p781_p0 = pnand %p760_p12, %p1064_p11 }
  0x92   : > { %s686_s4 = scalar_lea.sflag [#allocation4], %s685_s3 }
  0x93   : > { %p782_p1 = pneg %p781_p0 }
  0x95   : > { %969 = dma.done.wait (%p782_p1), %s686_s4, 256  }
  0x96   : > { %971 = vsyncadd (%p782_p1), %s686_s4, 4294967040  ;;  %s17_s11 = sadd.s32 1, %s994_s11   ;;  %s1298_s6 = smov %s978_s7 }
  0x97   : > { %p14_p2 = scmp.ge.s32.totalorder %s17_s11, 4   ;;  %s1299_s7 = smov %s982_s8 }
  0x98   : > { %s1300_s8 = smov %s1062_s20  ;;  %s1301_s9 = smov %s990_s10 }
  0x99   : > { %s1302_s10 = smov %s1304_s14  ;;  %16 = sbr.rel (!%p14_p2) target bundleno = 6 (0x6), region = 75 }
  0x9e   :  { %692 = vsyncpa [#allocation3], 1 }
  0x9f   :  { %694 = vsyncpa [#allocation3 + $0x1], 1 }
  0xa0   :  { %695 = vsyncpa [#allocation4], 1 }
  0xa1   :  { %697 = vsyncpa [#allocation4 + $0x1], 1 }

</bundles_post_ra>
